<compile_context>
chip_gen: v7x
topology: tpu7x:2x2x1
jax: 0.10.0
libtpu: 0.0.40
codegen_flags: <defaults>
</compile_context>

<pallas_src>
import itertools
import numpy as np
from concurrent.futures import ThreadPoolExecutor

import jax
import jax.numpy as jnp
from jax.experimental import pallas as pl
from jax.experimental.pallas import tpu as pltpu


# ----------------------------------------------------------------------------
# Packed-parameter layouts (row offsets 8-aligned so every in-kernel static slice
# starts on a sublane-tile boundary).
# ----------------------------------------------------------------------------

def _a8(n):
    return ((int(n) + 7) // 8) * 8


def _rpack_offsets(n1, hid):
    NH = n1 * hid
    o = {}
    o["scat"] = 0                      # (hid, NH) lane-tiled identity (0/1 scatter)
    o["blk"] = _a8(hid)                # (n1, NH)  row i hot in lanes [i*hid,(i+1)*hid)
    o["w1x"] = o["blk"] + _a8(n1)      # (NH, NH)  blockdiag(readout w1[1:, :])
    o["w1p"] = o["w1x"] + _a8(NH)      # (n1, NH)  blockdiag(readout w1[0:1, :])
    o["rw2"] = o["w1p"] + _a8(n1)      # (NH, NH)  blockdiag(readout w2), lanes [0:n1]
    o["rb1"] = o["rw2"] + _a8(NH)      # (1, NH)   readout b1 lane-tiled
    o["rb2"] = o["rb1"] + 8            # (1, NH)   readout b2, lanes [0:n1]
    o["rows"] = o["rb2"] + 8
    return o


def _mpack_offsets(hid):
    o = {}
    o["w1x"] = 0                       # (hid, hid) agg w1[:hid]
    o["w1r"] = _a8(hid)                # (6, hid)   agg w1[hid:]
    o["b1"] = o["w1r"] + _a8(6)        # (1, hid)
    o["w2"] = o["b1"] + 8              # (hid, hid)
    o["b2"] = o["w2"] + _a8(hid)       # (1, hid)
    o["rows"] = o["b2"] + 8
    return o


def _ipack_offsets(hid):
    o = {"w1": 0, "b1": 8, "w2": 16}
    o["b2"] = 16 + _a8(hid)
    o["rows"] = o["b2"] + 8
    return o


def _pack_readout(rp, n1, hid):
    NH = n1 * hid
    o = _rpack_offsets(n1, hid)
    eye_n1 = np.eye(n1, dtype=np.float32)
    P = np.zeros((o["rows"], NH), dtype=np.float32)
    P[o["scat"]:o["scat"] + hid, :] = np.tile(np.eye(hid, dtype=np.float32), (1, n1))
    P[o["blk"]:o["blk"] + n1, :] = np.repeat(eye_n1, hid, axis=1)
    P[o["w1x"]:o["w1x"] + NH, :] = np.kron(eye_n1, np.asarray(rp["w1x"], dtype=np.float32))
    P[o["w1p"]:o["w1p"] + n1, :] = np.kron(eye_n1, np.asarray(rp["w1p"], dtype=np.float32))
    P[o["rw2"]:o["rw2"] + NH, 0:n1] = np.kron(eye_n1, np.asarray(rp["w2"], dtype=np.float32))
    P[o["rb1"], :] = np.tile(np.asarray(rp["b1"], dtype=np.float32).reshape(-1), n1)
    P[o["rb2"], 0:n1] = float(np.asarray(rp["b2"]).reshape(-1)[0])
    return jnp.asarray(P)


def _pack_mlp(mp, hid):
    o = _mpack_offsets(hid)
    M = np.zeros((o["rows"], hid), dtype=np.float32)
    M[o["w1x"]:o["w1x"] + hid, :] = np.asarray(mp["w1x"], dtype=np.float32)
    M[o["w1r"]:o["w1r"] + 6, :] = np.asarray(mp["w1r"], dtype=np.float32)
    M[o["b1"], :] = np.asarray(mp["b1"], dtype=np.float32).reshape(-1)
    M[o["w2"]:o["w2"] + hid, :] = np.asarray(mp["w2"], dtype=np.float32)
    M[o["b2"], :] = np.asarray(mp["b2"], dtype=np.float32).reshape(-1)
    return jnp.asarray(M)


def _pack_init(ip, hid):
    o = _ipack_offsets(hid)
    I = np.zeros((o["rows"], hid), dtype=np.float32)
    I[o["w1"], :] = np.asarray(ip["w1"], dtype=np.float32).reshape(-1)
    I[o["b1"], :] = np.asarray(ip["b1"], dtype=np.float32).reshape(-1)
    I[o["w2"]:o["w2"] + hid, :] = np.asarray(ip["w2"], dtype=np.float32)
    I[o["b2"], :] = np.asarray(ip["b2"], dtype=np.float32).reshape(-1)
    return jnp.asarray(I)


# ----------------------------------------------------------------------------
# Pallas kernels (built per (n1, n2, hid); all offsets/shapes are static Python ints)
# ----------------------------------------------------------------------------

def _build_kernels(n1, n2, hid):
    NH = n1 * hid
    N = n1 + n2
    ro = _rpack_offsets(n1, hid)
    mo = _mpack_offsets(hid)
    io = _ipack_offsets(hid)

    def _bdot(a, b):
        # bf16 MXU operands (single-pass matmul on all generations); f32 accumulation.
        return jnp.dot(a.astype(jnp.bfloat16), b.astype(jnp.bfloat16),
                       preferred_element_type=jnp.float32)

    def _readout_softmax(x1, x2, pT, rpack_ref):
        scat = rpack_ref[ro["scat"]:ro["scat"] + hid, :]          # (hid, NH) 0/1
        blkm = rpack_ref[ro["blk"]:ro["blk"] + n1, :]             # (n1, NH)  0/1
        w1x = rpack_ref[ro["w1x"]:ro["w1x"] + NH, :]              # (NH, NH)
        rw2 = rpack_ref[ro["rw2"]:ro["rw2"] + NH, 0:n1]           # (NH, n1)
        rb1 = rpack_ref[ro["rb1"]:ro["rb1"] + 1, :]               # (1, NH)
        rb2 = rpack_ref[ro["rb2"]:ro["rb2"] + 1, 0:n1]            # (1, n1)

        # Lane-tile x2 / row-major-flatten x1 via the shared 0/1 scatter matrix.
        # These dots are pure data movement, kept in f32 so x is moved exactly.
        x2t = jnp.dot(x2, scat, preferred_element_type=jnp.float32)      # (n2, NH)
        x1t = jnp.dot(x1, scat, preferred_element_type=jnp.float32)      # (n1, NH)
        x1f = jnp.sum(x1t * blkm, axis=0, keepdims=True)                 # (1, NH)

        d_t = -jnp.abs(x1f - x2t) * 0.1                                  # (n2, NH)

        pre = _bdot(d_t, w1x) + rb1
        if pT is not None:  # layer 0 has P == 0 -> term dropped at trace time
            w1p = rpack_ref[ro["w1p"]:ro["w1p"] + n1, :]                 # (n1, NH)
            pre = pre + _bdot(pT, w1p)
        h = jnp.maximum(pre, 0.0)
        logits_t = _bdot(h, rw2) + rb2                                   # (n2, n1) == logits.T

        # dim-0 softmax of the reference == lane softmax here; nan_to_num is a no-op
        # for finite (max-subtracted) logits, so the dead NaN/clip path is removed.
        m = jnp.max(logits_t, axis=1, keepdims=True)
        e = jnp.exp(logits_t - m)
        s_t = e * pl.reciprocal(jnp.sum(e, axis=1, keepdims=True), approx=True)
        return s_t                                                       # S^T, (n2, n1)

    def _init_x(gblk, ipack_ref):
        iw1 = ipack_ref[io["w1"]:io["w1"] + 1, :]
        ib1 = ipack_ref[io["b1"]:io["b1"] + 1, :]
        iw2 = ipack_ref[io["w2"]:io["w2"] + hid, :]
        ib2 = ipack_ref[io["b2"]:io["b2"] + 1, :]
        deg = jnp.sum(gblk, axis=1, keepdims=True)                       # (N, 1) degrees
        h = jnp.maximum(deg * iw1 + ib1, 0.0)                            # (N, hid)
        return _bdot(h, iw2) + ib2                                       # (N, hid)

    def _agg_update(gblk, x, s_t, r1_ref, mpack_ref, r_scr, xo_ref):
        mw1x = mpack_ref[mo["w1x"]:mo["w1x"] + hid, :]
        mw1r = mpack_ref[mo["w1r"]:mo["w1r"] + 6, :]
        mb1 = mpack_ref[mo["b1"]:mo["b1"] + 1, :]
        mw2 = mpack_ref[mo["w2"]:mo["w2"] + hid, :]
        mb2 = mpack_ref[mo["b2"]:mo["b2"] + 1, :]
        r1 = r1_ref[...]
        r_scr[0:n1, :] = r1
        r_scr[n1:N, :] = _bdot(s_t, r1)           # r_2 = S^T @ r_1
        r = r_scr[...]                            # stacked [r_1; r_2]
        gx = _bdot(gblk, x)                       # blockdiag(G1+I, G2+I) @ [x1; x2]
        gr = _bdot(gblk, r)
        h = jnp.maximum(_bdot(gx, mw1x) + _bdot(gr, mw1r) + mb1, 0.0)
        xo_ref[...] = _bdot(h, mw2) + mb2         # stacked updated [x1; x2]

    def layer0_kernel(gblk_ref, r1_ref, ipack_ref, rpack_ref, mpack_ref,
                      st_ref, wt_ref, xo_ref, r_scr):
        gblk = gblk_ref[...]
        x = _init_x(gblk, ipack_ref)
        s_t = _readout_softmax(x[0:n1, :], x[n1:N, :], None, rpack_ref)
        st_ref[...] = s_t
        wt_ref[...] = jnp.log(s_t * (1.5 * n1))
        _agg_update(gblk, x, s_t, r1_ref, mpack_ref, r_scr, xo_ref)

    def layer0_final_kernel(gblk_ref, ipack_ref, rpack_ref, st_ref, wt_ref):
        x = _init_x(gblk_ref[...], ipack_ref)
        s_t = _readout_softmax(x[0:n1, :], x[n1:N, :], None, rpack_ref)
        st_ref[...] = s_t
        wt_ref[...] = jnp.log(s_t * (1.5 * n1))

    def mid_kernel(pT_ref, x_ref, gblk_ref, r1_ref, rpack_ref, mpack_ref,
                   st_ref, wt_ref, xo_ref, r_scr):
        s_t = _readout_softmax(x_ref[0:n1, :], x_ref[n1:N, :], pT_ref[...], rpack_ref)
        st_ref[...] = s_t
        wt_ref[...] = jnp.log(s_t * (1.5 * n1))
        _agg_update(gblk_ref[...], x_ref[...], s_t, r1_ref, mpack_ref, r_scr, xo_ref)

    def final_kernel(pT_ref, x_ref, rpack_ref, st_ref, wt_ref):
        s_t = _readout_softmax(x_ref[0:n1, :], x_ref[n1:N, :], pT_ref[...], rpack_ref)
        st_ref[...] = s_t
        wt_ref[...] = jnp.log(s_t * (1.5 * n1))

    return {"layer0": layer0_kernel, "layer0_final": layer0_final_kernel,
            "mid": mid_kernel, "final": final_kernel}


# ----------------------------------------------------------------------------
# Host-side Hungarian refinement (identical role to the reference's host loop)
# ----------------------------------------------------------------------------
try:
    from scipy.optimize import linear_sum_assignment as _lsa

    def _max_assign_sum(W):
        r, c = _lsa(-W)
        return float(W[r, c].sum())
except Exception:  # pragma: no cover - fallback when scipy is unavailable
    def _max_assign_sum(W):
        W = np.asarray(W, dtype=np.float64)
        r, c = W.shape
        if r == 0 or c == 0:
            return 0.0
        if r > c:
            W = W.T
            r, c = c, r
        rows = np.arange(r)
        best = -np.inf
        for perm in itertools.permutations(range(c), r):
            s = W[rows, list(perm)].sum()
            if s > best:
                best = s
        return float(best)


def _hungarian_refine(pool, W, adj1, adj2, n1, n2):
    # TODO(synk): the per-pair Hungarian refinement (scipy linear_sum_assignment) has no
    # Pallas/JAX equivalent; it stays on host exactly like the reference.  The n1*n2 tiny
    # solves are dispatched per-row to a thread pool to shorten the host critical path.
    P = np.zeros((n1, n2), dtype=np.float32)

    def row(i):
        Wi = W[adj1[i], :]
        out = np.empty((n2,), dtype=np.float32)
        for j in range(n2):
            out[j] = _max_assign_sum(Wi[:, adj2[j]])
        return i, out

    for i, out in pool.map(row, range(n1)):
        P[i] = out
    return P


# ----------------------------------------------------------------------------
# Parameter construction (deterministic, synthetic)
# ----------------------------------------------------------------------------

def _init_linear(key, fan_in, fan_out):
    k1, k2 = jax.random.split(key)
    bound = 1.0 / np.sqrt(fan_in)
    w = jax.random.uniform(k1, (fan_in, fan_out), jnp.float32, -bound, bound)
    b = jax.random.uniform(k2, (1, fan_out), jnp.float32, -bound, bound)
    return w, b


def _init_mlp(key, din, hid, dout):
    # MLP(din, hid, dout, 2) == Linear(din,hid) -> ReLU -> Linear(hid,dout)
    k1, k2 = jax.random.split(key)
    w1, b1 = _init_linear(k1, din, hid)
    w2, b2 = _init_linear(k2, hid, dout)
    return dict(w1=w1, b1=b1, w2=w2, b2=b2)


class GNNGM1Pallas:
    def __init__(self, num_layers, gnn_layers, hid, key):
        del gnn_layers  # unused in the reference forward as well
        self.num_layers = num_layers
        self.hid = hid
        keys = jax.random.split(key, 1 + 2 * num_layers)
        self.init_params = _init_mlp(keys[0], 1, hid, hid)
        self.readout_params = []
        self.mlp_params = []
        in_channel = hid
        for i in range(num_layers):
            rp = _init_mlp(keys[1 + 2 * i], in_channel + 1, hid, 1)
            rp["w1p"] = rp["w1"][0:1, :]   # row 0 of w1 multiplies the P feature
            rp["w1x"] = rp["w1"][1:, :]    # rows 1: multiply the -|x1-x2|/10 features
            self.readout_params.append(rp)

            mp = _init_mlp(keys[2 + 2 * i], in_channel + 6, hid, hid)
            mp["w1x"] = mp["w1"][:in_channel, :]
            mp["w1r"] = mp["w1"][in_channel:, :]
            self.mlp_params.append(mp)
            in_channel = hid
        self._pack_cache = {}
        self._call_cache = {}

    # --- packed weights / pallas callables (cached per problem size) ------------
    def _packs(self, n1):
        if n1 not in self._pack_cache:
            hid = self.hid
            self._pack_cache[n1] = (
                _pack_init(self.init_params, hid),
                [_pack_readout(rp, n1, hid) for rp in self.readout_params],
                [_pack_mlp(mp, hid) for mp in self.mlp_params],
            )
        return self._pack_cache[n1]

    def _calls(self, n1, n2):
        key = (n1, n2)
        if key not in self._call_cache:
            hid = self.hid
            N = n1 + n2
            ks = _build_kernels(n1, n2, hid)
            vmem = pl.BlockSpec(memory_space=pltpu.MemorySpace.VMEM)

            def make(kernel, n_in, out_shapes, scratch=()):
                # Grid-less call: every operand is a full-array VMEM block (whole working
                # set < 1 MiB, so tiling / pipelining / vmem_limit tuning is irrelevant).
                # If ever batched over graph pairs, add a leading "parallel" grid axis so
                # v7x's 2 TensorCores both get work.
                return pl.pallas_call(
                    kernel,
                    out_shape=tuple(jax.ShapeDtypeStruct(s, jnp.float32) for s in out_shapes),
                    in_specs=[vmem] * n_in,
                    out_specs=tuple(vmem for _ in out_shapes),
                    scratch_shapes=list(scratch),
                )

            r_scr = (pltpu.VMEM((N, 6), jnp.float32),)
            self._call_cache[key] = {
                "layer0": make(ks["layer0"], 5, ((n2, n1), (n2, n1), (N, hid)), r_scr),
                "layer0_final": make(ks["layer0_final"], 3, ((n2, n1), (n2, n1))),
                "mid": make(ks["mid"], 6, ((n2, n1), (n2, n1), (N, hid)), r_scr),
                "final": make(ks["final"], 3, ((n2, n1), (n2, n1))),
            }
        return self._call_cache[key]

    # --- forward -----------------------------------------------------------------
    def forward(self, G1, G2, adj1, adj2, rng_key):
        n1, n2 = int(G1.shape[0]), int(G2.shape[0])
        hid = self.hid
        N = n1 + n2

        # blockdiag(G1 + I, G2 + I): one stacked graph operator for both graphs.
        Gblk_np = np.zeros((N, N), dtype=np.float32)
        Gblk_np[:n1, :n1] = np.asarray(G1, dtype=np.float32) + np.eye(n1, dtype=np.float32)
        Gblk_np[n1:, n1:] = np.asarray(G2, dtype=np.float32) + np.eye(n2, dtype=np.float32)
        Gblk = jnp.asarray(Gblk_np)

        ipack, rpacks, mpacks = self._packs(n1)
        calls = self._calls(n1, n2)

        # random per-layer features are P-independent -> draw them all up front
        if self.num_layers > 1:
            rkeys = jax.random.split(rng_key, self.num_layers - 1)
            r_list = [jax.random.normal(k, (n1, 6), jnp.float32) for k in rkeys]
        else:
            r_list = []

        adj1 = [np.asarray(a) for a in adj1]
        adj2 = [np.asarray(a) for a in adj2]

        L = []
        Pnp = np.zeros((n1, n2), dtype=np.float32)
        PT = None
        X = None

        with ThreadPoolExecutor(max_workers=min(8, max(1, n1))) as pool:
            for li in range(self.num_layers):
                last = li == self.num_layers - 1
                if li == 0 and not last:
                    ST, WT, X = calls["layer0"](Gblk, r_list[0], ipack, rpacks[0], mpacks[0])
                elif li == 0 and last:
                    ST, WT = calls["layer0_final"](Gblk, ipack, rpacks[0])
                elif not last:
                    ST, WT, X = calls["mid"](PT, X, Gblk, r_list[li], rpacks[li], mpacks[li])
                else:
                    ST, WT = calls["final"](PT, X, rpacks[li])

                # S in natural (n1, n2) orientation; stays lazy on device (no host sync).
                L.append(jnp.transpose(ST))

                # Only per-layer host sync: the tiny W matrix feeding the Hungarian step.
                W = np.asarray(jax.device_get(WT)).T
                Pnp = _hungarian_refine(pool, W, adj1, adj2, n1, n2)
                PT = jnp.asarray(Pnp.T)

        return jnp.asarray(Pnp), L


# ----------------------------------------------------------------------------
# Example run
# ----------------------------------------------------------------------------

def _make_graph(key, n, p=0.12):
    u = jax.random.uniform(key, (n, n))
    A = (u < p).astype(jnp.float32)
    A = jnp.maximum(A, A.T)
    idx = jnp.arange(n)
    ring = ((idx[:, None] - idx[None, :]) % n == 1).astype(jnp.float32)
    A = jnp.maximum(A, jnp.maximum(ring, ring.T))
    A = A * (1.0 - jnp.eye(n, dtype=jnp.float32))
    return A


if __name__ == "__main__":
    key = jax.random.PRNGKey(0)
    kg1, kg2, kparam, krand = jax.random.split(key, 4)

    n1, n2 = 8, 8
    hid = 16          # n1 * hid == 128: the block-diagonal readout matmuls are lane-dense
    num_layers = 2

    G1 = _make_graph(kg1, n1)
    G2 = _make_graph(kg2, n2)

    # adjacency lists (include self, matching the +eye in the forward pass)
    G1np = np.asarray(G1)
    G2np = np.asarray(G2)
    adj1 = [np.flatnonzero(G1np[i] + np.eye(n1, dtype=np.float32)[i]) for i in range(n1)]
    adj2 = [np.flatnonzero(G2np[j] + np.eye(n2, dtype=np.float32)[j]) for j in range(n2)]

    model = GNNGM1Pallas(num_layers=num_layers, gnn_layers=3, hid=hid, key=kparam)
    P, L = model.forward(G1, G2, adj1, adj2, krand)

    jax.block_until_ready((P, L))
    assert P.shape == (n1, n2)
    assert len(L) == num_layers and all(S.shape == (n1, n2) for S in L)
    print("KERNEL_OK")
</pallas_src>

<mosaic_0001>
module attributes {stable_mosaic.version = 11 : i64} {
  func.func @layer0_kernel(%arg0: memref<16x16xf32, #tpu.memory_space<vmem>>, %arg1: memref<8x6xf32, #tpu.memory_space<vmem>>, %arg2: memref<40x16xf32, #tpu.memory_space<vmem>>, %arg3: memref<304x128xf32, #tpu.memory_space<vmem>>, %arg4: memref<56x16xf32, #tpu.memory_space<vmem>>, %arg5: memref<8x8xf32, #tpu.memory_space<vmem>>, %arg6: memref<8x8xf32, #tpu.memory_space<vmem>>, %arg7: memref<16x16xf32, #tpu.memory_space<vmem>>, %arg8: memref<16x6xf32, #tpu.memory_space<vmem>>) attributes {dimension_semantics = [], scalar_prefetch = 0 : i64, scratch_operands = 1 : i64, tpu.core_type = #tpu.core_type<tc>} {
    %c0 = arith.constant 0 : index
    %c0_0 = arith.constant 0 : index
    %0 = vector.load %arg0[%c0, %c0_0] : memref<16x16xf32, #tpu.memory_space<vmem>>, vector<16x16xf32>
    %c0_1 = arith.constant 0 : index
    %c0_2 = arith.constant 0 : index
    %1 = vector.load %arg2[%c0_1, %c0_2] : memref<40x16xf32, #tpu.memory_space<vmem>>, vector<1x16xf32>
    %c8 = arith.constant 8 : index
    %c0_3 = arith.constant 0 : index
    %2 = vector.load %arg2[%c8, %c0_3] : memref<40x16xf32, #tpu.memory_space<vmem>>, vector<1x16xf32>
    %c16 = arith.constant 16 : index
    %c0_4 = arith.constant 0 : index
    %3 = vector.load %arg2[%c16, %c0_4] : memref<40x16xf32, #tpu.memory_space<vmem>>, vector<16x16xf32>
    %c32 = arith.constant 32 : index
    %c0_5 = arith.constant 0 : index
    %4 = vector.load %arg2[%c32, %c0_5] : memref<40x16xf32, #tpu.memory_space<vmem>>, vector<1x16xf32>
    %cst = arith.constant dense<0.000000e+00> : vector<16xf32>
    %5 = vector.multi_reduction <add>, %0, %cst [1] : vector<16x16xf32> to vector<16xf32>
    %6 = vector.shape_cast %5 : vector<16xf32> to vector<16x1xf32>
    %7 = vector.broadcast %6 : vector<16x1xf32> to vector<16x16xf32>
    %8 = vector.broadcast %1 : vector<1x16xf32> to vector<16x16xf32>
    %9 = arith.mulf %7, %8 : vector<16x16xf32>
    %10 = vector.broadcast %2 : vector<1x16xf32> to vector<16x16xf32>
    %11 = arith.addf %9, %10 : vector<16x16xf32>
    %cst_6 = arith.constant 0.000000e+00 : f32
    %12 = vector.broadcast %cst_6 : f32 to vector<16x16xf32>
    %13 = arith.maximumf %11, %12 : vector<16x16xf32>
    %14 = arith.truncf %13 : vector<16x16xf32> to vector<16x16xbf16>
    %15 = arith.truncf %3 : vector<16x16xf32> to vector<16x16xbf16>
    %cst_7 = arith.constant dense<0.000000e+00> : vector<16x16xf32>
    %16 = tpu.matmul %14, %15, %cst_7 {dimension_numbers = #tpu.dot_dimension_numbers<[1], [0], [0], [1], [0, 0, 1, 1], [], []>} : vector<16x16xbf16>, vector<16x16xbf16>, vector<16x16xf32> -> vector<16x16xf32>
    %17 = vector.broadcast %4 : vector<1x16xf32> to vector<16x16xf32>
    %18 = arith.addf %16, %17 : vector<16x16xf32>
    %19 = vector.extract_strided_slice %18 {offsets = [0, 0], sizes = [8, 16], strides = [1, 1]} : vector<16x16xf32> to vector<8x16xf32>
    %20 = vector.extract_strided_slice %18 {offsets = [8, 0], sizes = [8, 16], strides = [1, 1]} : vector<16x16xf32> to vector<8x16xf32>
    %c0_8 = arith.constant 0 : index
    %c0_9 = arith.constant 0 : index
    %21 = vector.load %arg3[%c0_8, %c0_9] : memref<304x128xf32, #tpu.memory_space<vmem>>, vector<16x128xf32>
    %c16_10 = arith.constant 16 : index
    %c0_11 = arith.constant 0 : index
    %22 = vector.load %arg3[%c16_10, %c0_11] : memref<304x128xf32, #tpu.memory_space<vmem>>, vector<8x128xf32>
    %c24 = arith.constant 24 : index
    %c0_12 = arith.constant 0 : index
    %23 = vector.load %arg3[%c24, %c0_12] : memref<304x128xf32, #tpu.memory_space<vmem>>, vector<128x128xf32>
    %c160 = arith.constant 160 : index
    %c0_13 = arith.constant 0 : index
    %24 = vector.load %arg3[%c160, %c0_13] : memref<304x128xf32, #tpu.memory_space<vmem>>, vector<128x8xf32>
    %c288 = arith.constant 288 : index
    %c0_14 = arith.constant 0 : index
    %25 = vector.load %arg3[%c288, %c0_14] : memref<304x128xf32, #tpu.memory_space<vmem>>, vector<1x128xf32>
    %c296 = arith.constant 296 : index
    %c0_15 = arith.constant 0 : index
    %26 = vector.load %arg3[%c296, %c0_15] : memref<304x128xf32, #tpu.memory_space<vmem>>, vector<1x8xf32>
    %cst_16 = arith.constant dense<0.000000e+00> : vector<8x128xf32>
    %27 = tpu.matmul %20, %21, %cst_16 {dimension_numbers = #tpu.dot_dimension_numbers<[1], [0], [0], [1], [0, 0, 1, 1], [], []>} : vector<8x16xf32>, vector<16x128xf32>, vector<8x128xf32> -> vector<8x128xf32>
    %cst_17 = arith.constant dense<0.000000e+00> : vector<8x128xf32>
    %28 = tpu.matmul %19, %21, %cst_17 {dimension_numbers = #tpu.dot_dimension_numbers<[1], [0], [0], [1], [0, 0, 1, 1], [], []>} : vector<8x16xf32>, vector<16x128xf32>, vector<8x128xf32> -> vector<8x128xf32>
    %29 = arith.mulf %28, %22 : vector<8x128xf32>
    %cst_18 = arith.constant dense<0.000000e+00> : vector<128xf32>
    %30 = vector.multi_reduction <add>, %29, %cst_18 [0] : vector<8x128xf32> to vector<128xf32>
    %31 = vector.shape_cast %30 : vector<128xf32> to vector<1x128xf32>
    %32 = vector.broadcast %31 : vector<1x128xf32> to vector<8x128xf32>
    %33 = arith.subf %32, %27 : vector<8x128xf32>
    %34 = math.absf %33 : vector<8x128xf32>
    %cst_19 = arith.constant 0.000000e+00 : f32
    %35 = vector.broadcast %cst_19 : f32 to vector<8x128xf32>
    %36 = arith.subf %35, %34 : vector<8x128xf32>
    %cst_20 = arith.constant 1.000000e-01 : f32
    %37 = vector.broadcast %cst_20 : f32 to vector<8x128xf32>
    %38 = arith.mulf %36, %37 : vector<8x128xf32>
    %39 = arith.truncf %38 : vector<8x128xf32> to vector<8x128xbf16>
    %40 = arith.truncf %23 : vector<128x128xf32> to vector<128x128xbf16>
    %cst_21 = arith.constant dense<0.000000e+00> : vector<8x128xf32>
    %41 = tpu.matmul %39, %40, %cst_21 {dimension_numbers = #tpu.dot_dimension_numbers<[1], [0], [0], [1], [0, 0, 1, 1], [], []>} : vector<8x128xbf16>, vector<128x128xbf16>, vector<8x128xf32> -> vector<8x128xf32>
    %42 = vector.broadcast %25 : vector<1x128xf32> to vector<8x128xf32>
    %43 = arith.addf %41, %42 : vector<8x128xf32>
    %cst_22 = arith.constant 0.000000e+00 : f32
    %44 = vector.broadcast %cst_22 : f32 to vector<8x128xf32>
    %45 = arith.maximumf %43, %44 : vector<8x128xf32>
    %46 = arith.truncf %45 : vector<8x128xf32> to vector<8x128xbf16>
    %47 = arith.truncf %24 : vector<128x8xf32> to vector<128x8xbf16>
    %cst_23 = arith.constant dense<0.000000e+00> : vector<8x8xf32>
    %48 = tpu.matmul %46, %47, %cst_23 {dimension_numbers = #tpu.dot_dimension_numbers<[1], [0], [0], [1], [0, 0, 1, 1], [], []>} : vector<8x128xbf16>, vector<128x8xbf16>, vector<8x8xf32> -> vector<8x8xf32>
    %49 = vector.broadcast %26 : vector<1x8xf32> to vector<8x8xf32>
    %50 = arith.addf %48, %49 : vector<8x8xf32>
    %cst_24 = arith.constant dense<0xFF800000> : vector<8xf32>
    %51 = vector.multi_reduction <maximumf>, %50, %cst_24 [1] : vector<8x8xf32> to vector<8xf32>
    %52 = vector.shape_cast %51 : vector<8xf32> to vector<8x1xf32>
    %53 = vector.broadcast %52 : vector<8x1xf32> to vector<8x8xf32>
    %54 = arith.subf %50, %53 : vector<8x8xf32>
    %55 = math.exp %54 : vector<8x8xf32>
    %cst_25 = arith.constant dense<0.000000e+00> : vector<8xf32>
    %56 = vector.multi_reduction <add>, %55, %cst_25 [1] : vector<8x8xf32> to vector<8xf32>
    %57 = vector.shape_cast %56 : vector<8xf32> to vector<8x1xf32>
    %58 = tpu.reciprocal %57 {approx = true} : vector<8x1xf32> -> vector<8x1xf32>
    %59 = vector.broadcast %58 : vector<8x1xf32> to vector<8x8xf32>
    %60 = arith.mulf %55, %59 : vector<8x8xf32>
    %c0_26 = arith.constant 0 : index
    %c0_27 = arith.constant 0 : index
    %61 = vector.load %arg5[%c0_26, %c0_27] : memref<8x8xf32, #tpu.memory_space<vmem>>, vector<8x8xf32>
    tpu.vector_store %arg5[%c0_26, %c0_27], %60 {strides = array<i32>} : memref<8x8xf32, #tpu.memory_space<vmem>>, vector<8x8xf32>,
    %cst_28 = arith.constant 1.200000e+01 : f32
    %62 = vector.broadcast %cst_28 : f32 to vector<8x8xf32>
    %63 = arith.mulf %60, %62 : vector<8x8xf32>
    %64 = math.log %63 : vector<8x8xf32>
    %c0_29 = arith.constant 0 : index
    %c0_30 = arith.constant 0 : index
    %65 = vector.load %arg6[%c0_29, %c0_30] : memref<8x8xf32, #tpu.memory_space<vmem>>, vector<8x8xf32>
    tpu.vector_store %arg6[%c0_29, %c0_30], %64 {strides = array<i32>} : memref<8x8xf32, #tpu.memory_space<vmem>>, vector<8x8xf32>,
    %c0_31 = arith.constant 0 : index
    %c0_32 = arith.constant 0 : index
    %66 = vector.load %arg4[%c0_31, %c0_32] : memref<56x16xf32, #tpu.memory_space<vmem>>, vector<16x16xf32>
    %c16_33 = arith.constant 16 : index
    %c0_34 = arith.constant 0 : index
    %67 = vector.load %arg4[%c16_33, %c0_34] : memref<56x16xf32, #tpu.memory_space<vmem>>, vector<6x16xf32>
    %c24_35 = arith.constant 24 : index
    %c0_36 = arith.constant 0 : index
    %68 = vector.load %arg4[%c24_35, %c0_36] : memref<56x16xf32, #tpu.memory_space<vmem>>, vector<1x16xf32>
    %c32_37 = arith.constant 32 : index
    %c0_38 = arith.constant 0 : index
    %69 = vector.load %arg4[%c32_37, %c0_38] : memref<56x16xf32, #tpu.memory_space<vmem>>, vector<16x16xf32>
    %c48 = arith.constant 48 : index
    %c0_39 = arith.constant 0 : index
    %70 = vector.load %arg4[%c48, %c0_39] : memref<56x16xf32, #tpu.memory_space<vmem>>, vector<1x16xf32>
    %c0_40 = arith.constant 0 : index
    %c0_41 = arith.constant 0 : index
    %71 = vector.load %arg1[%c0_40, %c0_41] : memref<8x6xf32, #tpu.memory_space<vmem>>, vector<8x6xf32>
    %c0_42 = arith.constant 0 : index
    %c0_43 = arith.constant 0 : index
    %72 = vector.load %arg8[%c0_42, %c0_43] : memref<16x6xf32, #tpu.memory_space<vmem>>, vector<8x6xf32>
    tpu.vector_store %arg8[%c0_42, %c0_43], %71 {strides = array<i32>} : memref<16x6xf32, #tpu.memory_space<vmem>>, vector<8x6xf32>,
    %73 = arith.truncf %60 : vector<8x8xf32> to vector<8x8xbf16>
    %74 = arith.truncf %71 : vector<8x6xf32> to vector<8x6xbf16>
    %cst_44 = arith.constant dense<0.000000e+00> : vector<8x6xf32>
    %75 = tpu.matmul %73, %74, %cst_44 {dimension_numbers = #tpu.dot_dimension_numbers<[1], [0], [0], [1], [0, 0, 1, 1], [], []>} : vector<8x8xbf16>, vector<8x6xbf16>, vector<8x6xf32> -> vector<8x6xf32>
    %c8_45 = arith.constant 8 : index
    %c0_46 = arith.constant 0 : index
    %76 = vector.load %arg8[%c8_45, %c0_46] : memref<16x6xf32, #tpu.memory_space<vmem>>, vector<8x6xf32>
    tpu.vector_store %arg8[%c8_45, %c0_46], %75 {strides = array<i32>} : memref<16x6xf32, #tpu.memory_space<vmem>>, vector<8x6xf32>,
    %c0_47 = arith.constant 0 : index
    %c0_48 = arith.constant 0 : index
    %77 = vector.load %arg8[%c0_47, %c0_48] : memref<16x6xf32, #tpu.memory_space<vmem>>, vector<16x6xf32>
    %78 = arith.truncf %0 : vector<16x16xf32> to vector<16x16xbf16>
    %79 = arith.truncf %18 : vector<16x16xf32> to vector<16x16xbf16>
    %cst_49 = arith.constant dense<0.000000e+00> : vector<16x16xf32>
    %80 = tpu.matmul %78, %79, %cst_49 {dimension_numbers = #tpu.dot_dimension_numbers<[1], [0], [0], [1], [0, 0, 1, 1], [], []>} : vector<16x16xbf16>, vector<16x16xbf16>, vector<16x16xf32> -> vector<16x16xf32>
    %81 = arith.truncf %0 : vector<16x16xf32> to vector<16x16xbf16>
    %82 = arith.truncf %77 : vector<16x6xf32> to vector<16x6xbf16>
    %cst_50 = arith.constant dense<0.000000e+00> : vector<16x6xf32>
    %83 = tpu.matmul %81, %82, %cst_50 {dimension_numbers = #tpu.dot_dimension_numbers<[1], [0], [0], [1], [0, 0, 1, 1], [], []>} : vector<16x16xbf16>, vector<16x6xbf16>, vector<16x6xf32> -> vector<16x6xf32>
    %84 = arith.truncf %80 : vector<16x16xf32> to vector<16x16xbf16>
    %85 = arith.truncf %66 : vector<16x16xf32> to vector<16x16xbf16>
    %cst_51 = arith.constant dense<0.000000e+00> : vector<16x16xf32>
    %86 = tpu.matmul %84, %85, %cst_51 {dimension_numbers = #tpu.dot_dimension_numbers<[1], [0], [0], [1], [0, 0, 1, 1], [], []>} : vector<16x16xbf16>, vector<16x16xbf16>, vector<16x16xf32> -> vector<16x16xf32>
    %87 = arith.truncf %83 : vector<16x6xf32> to vector<16x6xbf16>
    %88 = arith.truncf %67 : vector<6x16xf32> to vector<6x16xbf16>
    %cst_52 = arith.constant dense<0.000000e+00> : vector<16x16xf32>
    %89 = tpu.matmul %87, %88, %cst_52 {dimension_numbers = #tpu.dot_dimension_numbers<[1], [0], [0], [1], [0, 0, 1, 1], [], []>} : vector<16x6xbf16>, vector<6x16xbf16>, vector<16x16xf32> -> vector<16x16xf32>
    %90 = arith.addf %86, %89 : vector<16x16xf32>
    %91 = vector.broadcast %68 : vector<1x16xf32> to vector<16x16xf32>
    %92 = arith.addf %90, %91 : vector<16x16xf32>
    %cst_53 = arith.constant 0.000000e+00 : f32
    %93 = vector.broadcast %cst_53 : f32 to vector<16x16xf32>
    %94 = arith.maximumf %92, %93 : vector<16x16xf32>
    %95 = arith.truncf %94 : vector<16x16xf32> to vector<16x16xbf16>
    %96 = arith.truncf %69 : vector<16x16xf32> to vector<16x16xbf16>
    %cst_54 = arith.constant dense<0.000000e+00> : vector<16x16xf32>
    %97 = tpu.matmul %95, %96, %cst_54 {dimension_numbers = #tpu.dot_dimension_numbers<[1], [0], [0], [1], [0, 0, 1, 1], [], []>} : vector<16x16xbf16>, vector<16x16xbf16>, vector<16x16xf32> -> vector<16x16xf32>
    %98 = vector.broadcast %70 : vector<1x16xf32> to vector<16x16xf32>
    %99 = arith.addf %97, %98 : vector<16x16xf32>
    %c0_55 = arith.constant 0 : index
    %c0_56 = arith.constant 0 : index
    %100 = vector.load %arg7[%c0_55, %c0_56] : memref<16x16xf32, #tpu.memory_space<vmem>>, vector<16x16xf32>
    tpu.vector_store %arg7[%c0_55, %c0_56], %99 {strides = array<i32>} : memref<16x16xf32, #tpu.memory_space<vmem>>, vector<16x16xf32>,
    return
  }
}

</mosaic_0001>

<bundles_post_ra>
// kernel: tpu_custom_call.1
= control target key start
LH: loop header
LB: loop body
LE: loop exit
PB: predicated region body
PF: predicated region fallthrough
CT: control target
= control target key end

     0   :  { %13 = vsyncpa [#allocation4], 0  ;;  %s1278_s0 = inlined_call_operand.vmem [shape: f32[16,16], index: 0, kind: input, shape index: {}]   ;;  %s1279_s1 = inlined_call_operand.vmem [shape: f32[8,6], index: 1, kind: input, shape index: {}]   ;;  %s1280_s2 = inlined_call_operand.vmem [shape: f32[40,16], index: 2, kind: input, shape index: {}]   ;;  %s1281_s3 = inlined_call_operand.hbm [shape: f32[304,128], index: 3, kind: input, shape index: {}]   ;;  %s1282_s4 = inlined_call_operand.vmem [shape: f32[56,16], index: 4, kind: input, shape index: {}]   ;;  %s1283_s5 = inlined_call_operand.hbm [shape: f32[8,8], index: 5, kind: output, shape index: {0}]   ;;  %s1284_s6 = inlined_call_operand.hbm [shape: f32[8,8], index: 6, kind: output, shape index: {1}]   ;;  %s1285_s7 = inlined_call_operand.hbm [shape: f32[16,16], index: 7, kind: output, shape index: {2}]  }
   0x1   :  { %14 = vsyncpa [#allocation5], 0 }
   0x2   :  { %15 = vsyncpa [#allocation8], 0  ;;  %s1051_s24 = smov [#allocation3]   ;;  %s957_s28 = scalar_lea.hbm %s1281_s3, 4864 }
   0x3   :  { %s27_s25 = sshll.u32 %s1051_s24, 4  ;;  %p958_p0 = scmp.ne.s32.totalorder %s1281_s3, %s957_s28  ;;  %s28_s25 = int_to_ptr.vmem [resolvable:$true] %s27_s25 }
   0x4   :  { %p961_p1 = scmp.lt.u32.totalorder %s957_s28, %s1281_s3 }
   0x6   :  { %p963_p2 = pnand %p961_p1, %p958_p0 }
   0x8   :  { %966 = shalt.err (!%p963_p2)
}
   0x9   :  { %s967_s10 = scalar_lea.vmem %s28_s25, 4864  ;;  %p972_p4 = scmp.lt.s32.totalorder %s28_s25, %s28_s25 }
   0xa   :  { %p968_p3 = scmp.ne.s32.totalorder %s28_s25, %s967_s10  ;;  %p973_p5 = scmp.lt.s32.totalorder %s967_s10, %s967_s10 }
   0xc   :  { %p974_p6 = por %p973_p5, %p972_p4 }
   0xe   :  { %p975_p7 = pnand %p974_p6, %p968_p3 }
  0x10   :  { %978 = shalt.err (!%p975_p7)
}
  0x11   :  { %s1052_s11 = smov 128   ;;  %s1053_s12 = smov 8  }
  0x12   :  { %33 = dma.hbm_to_vmem [thread:$0]  %s1281_s3, 4864, %s28_s25, [#allocation4], %s1052_s11, %s1052_s11, %s1053_s12  }
  0x13   :  { %1045 = dma.done.wait [#allocation4], 4864  }
  0x14   :  { %1046 = vsyncadd [#allocation4], 4294962432  ;;  %vm47_vm0 = vcmask 130048   ;;  %v40_v0 = vld [vmem:[%s1278_s0] sm:$0xff]  ;;  %v41_v1 = vld [vmem:[%s1278_s0 + $0x8] sm:$0xff]  ;;  %v1054_v8 = vmov 0.0  }
  0x15   :  { %v48_v2 = vsel %vm47_vm0, %v40_v0, 0.0  ;;  %v1122_v3 = vpack.c.bf16 %v41_v1, %v40_v0  ;;  %v51_v4 = vsel %vm47_vm0, %v41_v1, 0.0  ;;  %v44_v5 = vld [vmem:[%s1280_s2 + $0x10] sm:$0xff]  ;;  %v45_v6 = vld [vmem:[%s1280_s2 + $0x18] sm:$0xff]  ;;  %840 = vmatprep.subr.bf16.mxu0 %v1054_v8  ;;  %vm1055_vm1 = vmmov 0   ;;  %v121_v24 = vld [vmem:[#allocation3 + $0x18] sm:$0xff] }
  0x16   :  { %49 = vadd.xlane.f32.xlu0 %v48_v2  ;;  %v69_v7 = vpack.c.bf16 %v45_v6, %v44_v5  ;;  %842 = vmatprep.mubr.msk.bf16.mxu0 %vm1055_vm1, %v1054_v8  ;;  %v786_v9 = vld [vmem:[%s1280_s2] ss:$0 sm:$0xff]  ;;  %v787_v12 = vld [vmem:[%s1280_s2 + $0x8] ss:$0 sm:$0xff]  ;;  %v118_v20 = vld [vmem:[#allocation3] sm:$0xff]  ;;  %v1056_v23 = vmov 0.0|0.0  }
  0x17   :  { %850 = vmatprep.mubr.msk.f32.mxu1 %vm1055_vm1, %v1054_v8  ;;  %v119_v21 = vld [vmem:[#allocation3 + $0x8] sm:$0xff]  ;;  %936 = vmatprep.subr.bf16.mxu1 %v1056_v23  ;;  %v122_v25 = vld [vmem:[#allocation3 + $0x20] sm:$0xff]  ;;  %v788_v27 = vld [vmem:[%s1280_s2 + $0x20] ss:$0 sm:$0xff]  ;;  %vm419_vm2 = vcmask 64512   ;;  %vm451_vm3 = vcmask 1043456  }
  0x18   :  { %841 = vmatpush3.bf16.msra.mxu0 %v69_v7  ;;  %v937_v22 = vpack.c.bf16 %v119_v21, %v118_v20  ;;  %v313_v26 = vpack.c.bf16 %v122_v25, %v121_v24  ;;  %v123_v35 = vld [vmem:[#allocation3 + $0x28] sm:$0xff]  ;;  %v124_v36 = vld [vmem:[#allocation3 + $0x30] sm:$0xff]  ;;  %v125_v38 = vld [vmem:[#allocation3 + $0x38] sm:$0xff]  ;;  %vm444_vm4 = vcmask 48128   ;;  %vm593_vm5 = vcmask 1042432   ;;  %s1057_s18 = smov [#allocation7]  }
  0x19   :  { %860 = vmatprep.subr.bf16.mxu0 %v1054_v8  ;;  %v314_v37 = vpack.c.bf16 %v124_v36, %v123_v35  ;;  %v126_v39 = vld [vmem:[#allocation3 + $0x40] sm:$0xff]  ;;  %v127_v41 = vld [vmem:[#allocation3 + $0x48] sm:$0xff]  ;;  %v128_v42 = vld [vmem:[#allocation3 + $0x50] sm:$0xff]  ;;  %s758_s3 = sshll.u32 %s1057_s18, 4  ;;  %s1058_s19 = smov [#allocation6]   ;;  %s759_s3 = int_to_ptr.vmem [resolvable:$true] %s758_s3 }
  0x1a   :  { %52 = vadd.xlane.f32.xlu0 %v51_v4  ;;  %938 = vmatpush3.bf16.msra.mxu1 %v937_v22  ;;  %v315_v40 = vpack.c.bf16 %v126_v39, %v125_v38  ;;  %v316_v43 = vpack.c.bf16 %v128_v42, %v127_v41  ;;  %v129_v44 = vld [vmem:[#allocation3 + $0x58] sm:$0xff]  ;;  %v130_v45 = vld [vmem:[#allocation3 + $0x60] sm:$0xff]  ;;  %v131_v47 = vld [vmem:[#allocation3 + $0x68] sm:$0xff]  ;;  %s748_s20 = sshll.u32 %s1058_s19, 4  ;;  %s979_s21 = scalar_lea.vmem %s759_s3, 128  ;;  %s749_s20 = int_to_ptr.vmem [resolvable:$true] %s748_s20 }
  0x1b   :  { %939 = vmatprep.subr.bf16.mxu1 %v1056_v23  ;;  %v317_v46 = vpack.c.bf16 %v130_v45, %v129_v44  ;;  %v132_v48 = vld [vmem:[#allocation3 + $0x70] sm:$0xff]  ;;  %v133_v50 = vld [vmem:[#allocation3 + $0x78] sm:$0xff]  ;;  %v134_v51 = vld [vmem:[#allocation3 + $0x80] sm:$0xff]  ;;  %p980_p8 = scmp.ne.s32.totalorder %s759_s3, %s979_s21  ;;  %p984_p9 = scmp.lt.s32.totalorder %s759_s3, %s759_s3 }
  0x1c   :  { %v318_v49 = vpack.c.bf16 %v132_v48, %v131_v47  ;;  %v135_v52 = vld [vmem:[#allocation3 + $0x88] sm:$0xff]  ;;  %v319_v53 = vpack.c.bf16 %v134_v51, %v133_v50  ;;  %v136_v54 = vld [vmem:[#allocation3 + $0x90] sm:$0xff]  ;;  %v137_v56 = vld [vmem:[#allocation3 + $0xa0] sm:$0xff]  ;;  %p985_p10 = scmp.lt.s32.totalorder %s979_s21, %s979_s21 }
  0x1d   :  { %v320_v55 = vpack.c.bf16 %v136_v54, %v135_v52  ;;  %v138_v57 = vld [vmem:[#allocation3 + $0xa8] sm:$0xff]  ;;  %v139_v58 = vld [vmem:[#allocation3 + $0xb0] sm:$0xff]  ;;  %v140_v60 = vld [vmem:[#allocation3 + $0xb8] sm:$0xff] }
  0x1e   :  { %v367_v59 = vpack.c.bf16 %v138_v57, %v137_v56  ;;  %v368_v61 = vpack.c.bf16 %v140_v60, %v139_v58  ;;  %v141_v62 = vld [vmem:[#allocation3 + $0xc0] sm:$0xff]  ;;  %v142_v63 = vld [vmem:[#allocation3 + $0xc8] sm:$0xff]  ;;  %v143_v1 = vld [vmem:[#allocation3 + $0xd0] sm:$0xff]  ;;  %p986_p11 = por %p985_p10, %p984_p9 }
  0x1f   :  { %v369_v0 = vpack.c.bf16 %v142_v63, %v141_v62  ;;  %v144_v2 = vld [vmem:[#allocation3 + $0xd8] sm:$0xff]  ;;  %v145_v5 = vld [vmem:[#allocation3 + $0xe0] sm:$0xff]  ;;  %v146_v6 = vld [vmem:[#allocation3 + $0xe8] sm:$0xff] }
  0x20   :  { %v370_v4 = vpack.c.bf16 %v144_v2, %v143_v1  ;;  %v371_v7 = vpack.c.bf16 %v146_v6, %v145_v5  ;;  %v151_v35 = vld [vmem:[#allocation3 + $0x110] sm:$0xff]  ;;  %v152_v36 = vld [vmem:[#allocation3 + $0x118] sm:$0xff]  ;;  %v792_v38 = vld [vmem:[#allocation3 + $0x120] ss:$0 sm:$0xff]  ;;  %p987_p12 = pnand %p986_p11, %p980_p8 }
  0xa3   :  { %v50_v10 = vpop.xlane.xlu0 %49 }
  0xa4   :  { %v58_v11 = vmul.f32 %v786_v9, %v50_v10  ;;  %v148_v10 = vld [vmem:[#allocation3 + $0xf8] sm:$0xff] }
  0xa6   :  { %v64_v14 = vadd.f32 %v787_v12, %v58_v11 }
  0xa7   :  { %v53_v13 = vpop.xlane.xlu0 %52 }
  0xa8   :  { %v59_v15 = vmul.f32 %v786_v9, %v53_v13  ;;  %v66_v17 = vmax.f32 %v64_v14, 0.0  ;;  %v147_v9 = vld [vmem:[#allocation3 + $0xf0] sm:$0xff]  ;;  %v150_v13 = vld [vmem:[#allocation3 + $0x108] sm:$0xff] }
  0xa9   :  { %v372_v11 = vpack.c.bf16 %v148_v10, %v147_v9 }
  0xaa   :  { %v65_v16 = vadd.f32 %v787_v12, %v59_v15  ;;  %v149_v12 = vld [vmem:[#allocation3 + $0x100] sm:$0xff] }
  0xab   :  { %v373_v14 = vpack.c.bf16 %v150_v13, %v149_v12  ;;  %v436_v12 = vld [vmem:[%s1282_s4] sm:$0xff]  ;;  %v437_v13 = vld [vmem:[%s1282_s4 + $0x8] sm:$0xff] }
  0xac   :  { %v67_v18 = vmax.f32 %v65_v16, 0.0 }
  0xae   :  { %v68_v19 = vpack.c.bf16 %v67_v18, %v66_v17  ;;  %v120_v17 = vld [vmem:[#allocation3 + $0x10] sm:$0xff] }
  0xb0   :  { %843 = vmatmul.mubr.msk.bf16.vlgmr.msra.gmra.mrb[0].mxu0 %vm47_vm0, %v68_v19 }
  0xb1   :  { %876 = vmatprep.mubr.msk.bf16.mxu0 %vm1055_vm1, %v1054_v8  ;;  %861 = vmatpush3.bf16.msra.mxu0 %v313_v26 }
  0xb2   :  { %862 = vmatprep.subr.bf16.mxu0 %v1054_v8 }
  0xb5   :  { %863 = vmatpush3.bf16.msra.mxu0 %v314_v37  ;;  %v374_v37 = vpack.c.bf16 %v152_v36, %v151_v35  ;;  %v799_v36 = vld [vmem:[%s1282_s4 + $0x18] ss:$0 sm:$0xff] }
  0xb6   :  { %864 = vmatprep.subr.bf16.mxu0 %v1054_v8 }
  0xb9   :  { %865 = vmatpush3.bf16.msra.mxu0 %v315_v40 }
  0xba   :  { %866 = vmatprep.subr.bf16.mxu0 %v1054_v8 }
  0xbd   :  { %867 = vmatpush3.bf16.msra.mxu0 %v316_v43 }
  0xbe   :  { %868 = vmatprep.subr.bf16.mxu0 %v1054_v8 }
  0xc1   :  { %869 = vmatpush3.bf16.msra.mxu0 %v317_v46  ;;  %v793_v46 = vld [vmem:[#allocation3 + $0x128] ss:$0 sm:$0xff] }
  0xc2   :  { %870 = vmatprep.subr.bf16.mxu0 %v1054_v8 }
  0xc5   :  { %871 = vmatpush3.bf16.msra.mxu0 %v318_v49 }
  0xc6   :  { %872 = vmatprep.subr.bf16.mxu0 %v1054_v8 }
  0xc9   :  { %873 = vmatpush3.bf16.msra.mxu0 %v319_v53 }
  0xca   :  { %874 = vmatprep.subr.bf16.mxu0 %v1054_v8 }
  0xcd   :  { %875 = vmatpush3.bf16.msra.mxu0 %v320_v55  ;;  %v443_v55 = vld [vmem:[%s1279_s1] sm:$0xff] }
  0xce   :  { %900 = vmatprep.subr.bf16.mxu0 %v1054_v8  ;;  %v447_v56 = vpack.c.bf16 %v443_v55, %v443_v55  ;;  %445 = vst.msk [vmem:[#allocation2] sm:$0xff] %vm444_vm4, %v443_v55 }
  0xd0   :  { %v453_v57 = vsel %vm451_vm3, %v447_v56, 0 }
  0xd5   :  { %v496_v9 = vld [vmem:[#allocation2] sm:$0xff] }
 0x183   :  { %v111_v28 = vpop.f32.mrb[0].mxu0 }
 0x184   :  { %v844_v29 = vpop.f32.mrb[1].mxu0  ;;  %v1150_v31 = vadd.f32 %v788_v27, %v111_v28 }
 0x185   :  { %v114_v30 = vpop.f32.mrb[2].mxu0 }
 0x186   :  { %v1152_v32 = vadd.f32 %v788_v27, %v114_v30  ;;  %v845_v33 = vpop.f32.mrb[3].mxu0 }
 0x188   :  { %v499_v34 = vpack.c.bf16 %v1152_v32, %v1150_v31  ;;  %851 = vmatmul.mubr.msk.f32.vlgmr.msra.gmra.mrb[0].mxu1 %vm47_vm0, %v1152_v32 }
 0x189   :  { %941 = vmatpush3.bf16.msra.mxu1 %v937_v22  ;;  %857 = vmatprep.mubr.msk.f32.mxu1 %vm1055_vm1, %v1054_v8 }
 0x18a   :  { %880 = vmatprep.subr.bf16.mxu1 %v1054_v8 }
 0x18c   :  { %858 = vmatmul.mubr.msk.f32.vlgmr.msra.gmra.mrb[2].mxu1 %vm47_vm0, %v1150_v31 }
 0x18d   :  { %896 = vmatprep.mubr.msk.bf16.mxu1 %vm1055_vm1, %v1054_v8  ;;  %881 = vmatpush3.bf16.msra.mxu1 %v367_v59 }
 0x18e   :  { %882 = vmatprep.subr.bf16.mxu1 %v1054_v8 }
 0x191   :  { %883 = vmatpush3.bf16.msra.mxu1 %v368_v61 }
 0x192   :  { %884 = vmatprep.subr.bf16.mxu1 %v1054_v8 }
 0x195   :  { %885 = vmatpush3.bf16.msra.mxu1 %v369_v0 }
 0x196   :  { %886 = vmatprep.subr.bf16.mxu1 %v1054_v8 }
 0x199   :  { %887 = vmatpush3.bf16.msra.mxu1 %v370_v4 }
 0x19a   :  { %888 = vmatprep.subr.bf16.mxu1 %v1054_v8 }
 0x19d   :  { %889 = vmatpush3.bf16.msra.mxu1 %v371_v7 }
 0x19e   :  { %890 = vmatprep.subr.bf16.mxu1 %v1054_v8 }
 0x1a1   :  { %891 = vmatpush3.bf16.msra.mxu1 %v372_v11 }
 0x1a2   :  { %892 = vmatprep.subr.bf16.mxu1 %v1054_v8 }
 0x1a5   :  { %893 = vmatpush3.bf16.msra.mxu1 %v373_v14  ;;  %v587_v14 = vpack.c.bf16 %v437_v13, %v436_v12 }
 0x1a6   :  { %894 = vmatprep.subr.bf16.mxu1 %v1054_v8 }
 0x1a9   :  { %895 = vmatpush3.bf16.msra.mxu1 %v374_v37 }
 0x1aa   :  { %906 = vmatprep.subr.bf16.mxu1 %v1054_v8 }
 0x25b   :  { %v224_v15 = vpop.f32.mrb[0].mxu1 }
 0x25c   :  { %v852_v16 = vpop.f32.mrb[1].mxu1 }
 0x25f   :  { %v297_v18 = vpop.f32.mrb[2].mxu1 }
 0x260   :  { %v301_v19 = vmul.f32 %v297_v18, %v120_v17  ;;  %v859_v20 = vpop.f32.mrb[3].mxu1  ;;  %v438_v17 = vld [vmem:[%s1282_s4 + $0x10] sm:$0x3f] }
 0x261   :  { %v589_v18 = vpack.c.bf16 %v438_v17, %v438_v17 }
 0x262   :  { %v302_v21 = vrot.slane %v301_v19, 4 }
 0x264   :  { %v303_v22 = vadd.f32 %v302_v21, %v301_v19  ;;  %v595_v19 = vsel %vm593_vm5, %v589_v18, 0 }
 0x266   :  { %v304_v23 = vrot.slane %v303_v22, 2 }
 0x268   :  { %v305_v24 = vadd.f32 %v304_v23, %v303_v22 }
 0x26a   :  { %v306_v25 = vrot.slane %v305_v24, 1 }
 0x26c   :  { %v307_v26 = vadd.f32 %v306_v25, %v305_v24 }
 0x26e   :  { %v308_v27 = vsub.f32 %v307_v26, %v224_v15 }
 0x270   :  { %v309_v28 = vand.u32 2147483647, %v308_v27 }
 0x272   :  { %v310_v29 = vsub.f32 0.0, %v309_v28 }
 0x274   :  { %v311_v30 = vmul.f32 0.1, %v310_v29  ;;  %v440_v29 = vld [vmem:[%s1282_s4 + $0x20] sm:$0xff] }
 0x276   :  { %v312_v33 = vpack.c.bf16 %v311_v30, %v311_v30  ;;  %v441_v30 = vld [vmem:[%s1282_s4 + $0x28] sm:$0xff] }
 0x278   :  { %877 = vmatmul.mubr.bf16.vlgmr.msra.gmra.mrb[4].mxu0 %v312_v33  ;;  %v691_v33 = vpack.c.bf16 %v441_v30, %v440_v29 }
 0x279   :  { %902 = vmatprep.mubr.msk.bf16.mxu0 %vm1055_vm1, %v1054_v8  ;;  %901 = vmatpush3.bf16.msra.mxu0 %v453_v57 }
 0x27a   :  { %912 = vmatprep.subr.bf16.mxu0 %v1054_v8 }
 0x34b   :  { %v359_v39 = vpop.f32.mrb[4].mxu0 }
 0x34c   :  { %v360_v40 = vadd.f32 %v792_v38, %v359_v39  ;;  %v878_v41 = vpop.f32.mrb[5].mxu0 }
 0x34d   :  { %v362_v42 = vpop.f32.mrb[6].mxu0 }
 0x34e   :  { %v365_v43 = vmax.f32 %v360_v40, 0.0  ;;  %v879_v44 = vpop.f32.mrb[7].mxu0 }
 0x350   :  { %v366_v45 = vpack.c.bf16 %v365_v43, %v365_v43 }
 0x352   :  { %897 = vmatmul.mubr.bf16.vlgmr.msra.gmra.mrb[4].mxu1 %v366_v45 }
 0x353   :  { %907 = vmatpush3.bf16.msra.mxu1 %v499_v34  ;;  %908 = vmatprep.mubr.msk.bf16.mxu1 %vm1055_vm1, %v1054_v8 }
 0x354   :  { %918 = vmatprep.subr.bf16.mxu1 %v1054_v8 }
 0x35a   :  { %909 = vmatmul.mubr.msk.bf16.vlgmr.msra.gmra.mrb[8].mxu1 %vm47_vm0, %v1122_v3 }
 0x35b   :  { %920 = vmatprep.mubr.msk.bf16.mxu1 %vm1055_vm1, %v1054_v8  ;;  %919 = vmatpush3.bf16.msra.mxu1 %v595_v19 }
 0x35c   :  { %930 = vmatprep.subr.bf16.mxu1 %v1054_v8 }
 0x425   :  { %v413_v47 = vpop.f32.mrb[4].mxu1 }
 0x426   :  { %v414_v48 = vadd.f32 %v793_v46, %v413_v47  ;;  %v898_v49 = vpop.f32.mrb[5].mxu1 }
 0x427   :  { %v416_v50 = vpop.f32.mrb[6].mxu1 }
 0x428   :  { %v899_v51 = vpop.f32.mrb[7].mxu1  ;;  %v420_v31 = vsel %vm419_vm2, %v414_v48, -inf }
 0x429   :  { %421 = vmax.xlane.f32.xlu1 %v420_v31 }
 0x42d   :  { %v537_v1 = vpop.f32.mrb[8].mxu1 }
 0x42e   :  { %v910_v2 = vpop.f32.mrb[9].mxu1 }
 0x42f   :  { %v540_v15 = vpop.f32.mrb[10].mxu1 }
 0x430   :  { %v586_v16 = vpack.c.bf16 %v540_v15, %v537_v1 }
 0x4b6   :  { %v422_v32 = vpop.xlane.xlu1 %421 }
 0x4b7   :  { %v423_v34 = vsub.f32 %v414_v48, %v422_v32 }
 0x4b9   :  { %v424_v52 = vmul.f32 1.442695, %v423_v34 }
 0x4bb   :  { %951 = vpow2.f32 %v424_v52 }
 0x4c5   :  { %v952_v53 = vpop.eup %951 }
 0x4c6   :  { %v426_v54 = vsel %vm419_vm2, %v952_v53, 0.0 }
 0x4c7   :  { %427 = vadd.xlane.f32.xlu1 %v426_v54 }
 0x554   :  { %v428_v58 = vpop.xlane.xlu1 %427 }
 0x555   :  { %953 = vrcp.f32 %v428_v58 }
 0x55f   :  { %v954_v59 = vpop.eup %953 }
 0x560   :  { %v430_v60 = vmul.f32 %v954_v59, %v952_v53 }
 0x562   :  { %431 = vst.msk [vmem:[#allocation6] sm:$0xff] %vm419_vm2, %v430_v60  ;;  %v446_v61 = vpack.c.bf16 %v430_v60, %v430_v60  ;;  %v432_v62 = vmul.f32 12.0, %v430_v60 }
 0x564   :  { %903 = vmatmul.mubr.msk.bf16.vlgmr.msra.gmra.mrb[8].mxu0 %vm419_vm2, %v446_v61  ;;  %955 = vlog2.f32 %v432_v62 }
 0x565   :  { %914 = vmatprep.mubr.msk.bf16.mxu0 %vm1055_vm1, %v1054_v8 }
 0x56e   :  { %v956_v63 = vpop.eup %955 }
 0x56f   :  { %v434_v0 = vmul.f32 0.6931472, %v956_v63 }
 0x571   :  { %435 = vst.msk [vmem:[#allocation7] sm:$0xff] %vm419_vm2, %v434_v0 }
 0x637   :  { %v489_v4 = vpop.f32.mrb[8].mxu0 }
 0x638   :  { %495 = vst.msk [vmem:[#allocation2 + $0x8] sm:$0xff] %vm444_vm4, %v489_v4  ;;  %v904_v5 = vpop.f32.mrb[9].mxu0 }
 0x639   :  { %v492_v6 = vpop.f32.mrb[10].mxu0 }
 0x63a   :  { %v905_v7 = vpop.f32.mrb[11].mxu0 }
 0x63f   :  { %v497_v10 = vld [vmem:[#allocation2 + $0x8] sm:$0xff] }
 0x640   :  { %v544_v11 = vpack.c.bf16 %v497_v10, %v496_v9 }
 0x642   :  { %913 = vmatpush3.bf16.msra.mxu0 %v544_v11 }
 0x643   :  { %924 = vmatprep.subr.bf16.mxu0 %v1054_v8 }
 0x645   :  { %915 = vmatmul.mubr.msk.bf16.vlgmr.msra.gmra.mrb[12].mxu0 %vm47_vm0, %v1122_v3  ;;  %v911_v3 = vpop.f32.mrb[11].mxu1 }
 0x646   :  { %926 = vmatprep.mubr.msk.bf16.mxu0 %vm1055_vm1, %v1054_v8  ;;  %925 = vmatpush3.bf16.msra.mxu0 %v587_v14 }
 0x64d   :  { %927 = vmatmul.mubr.msk.bf16.vlgmr.msra.gmra.mrb[16].mxu0 %vm47_vm0, %v586_v16 }
 0x718   :  { %v579_v20 = vpop.f32.mrb[12].mxu0 }
 0x719   :  { %v916_v21 = vpop.f32.mrb[13].mxu0 }
 0x71a   :  { %v582_v22 = vpop.f32.mrb[14].mxu0 }
 0x71b   :  { %v588_v23 = vpack.c.bf16 %v582_v22, %v579_v20  ;;  %v917_v24 = vpop.f32.mrb[15].mxu0 }
 0x71d   :  { %921 = vmatmul.mubr.msk.bf16.vlgmr.msra.gmra.mrb[12].mxu1 %vm444_vm4, %v588_v23 }
 0x71e   :  { %932 = vmatprep.mubr.msk.bf16.mxu1 %vm1055_vm1, %v1054_v8  ;;  %931 = vmatpush3.bf16.msra.mxu1 %v691_v33 }
 0x720   :  { %v675_v25 = vpop.f32.mrb[16].mxu0 }
 0x721   :  { %v928_v26 = vpop.f32.mrb[17].mxu0 }
 0x722   :  { %v678_v27 = vpop.f32.mrb[18].mxu0 }
 0x723   :  { %v929_v28 = vpop.f32.mrb[19].mxu0 }
 0x7f0   :  { %v631_v35 = vpop.f32.mrb[12].mxu1 }
 0x7f1   :  { %v676_v8 = vadd.f32 %v675_v25, %v631_v35  ;;  %v922_v37 = vpop.f32.mrb[13].mxu1 }
 0x7f2   :  { %v634_v38 = vpop.f32.mrb[14].mxu1 }
 0x7f3   :  { %v686_v39 = vadd.f32 %v799_v36, %v676_v8  ;;  %v679_v40 = vadd.f32 %v678_v27, %v634_v38  ;;  %v923_v41 = vpop.f32.mrb[15].mxu1 }
 0x7f5   :  { %v687_v42 = vadd.f32 %v799_v36, %v679_v40  ;;  %v688_v43 = vmax.f32 %v686_v39, 0.0 }
 0x7f7   :  { %v689_v44 = vmax.f32 %v687_v42, 0.0 }
 0x7f9   :  { %v690_v45 = vpack.c.bf16 %v689_v44, %v688_v43 }
 0x7fb   :  { %933 = vmatmul.mubr.msk.bf16.vlgmr.msra.gmra.mrb[16].mxu1 %vm47_vm0, %v690_v45 }
 0x7fc   :  { %990 = shalt.err (!%p987_p12)
}
 0x7fd   :  { %s991_s23 = scalar_lea.hbm %s1284_s6, 128 }
 0x7fe   :  { %p992_p13 = scmp.ne.s32.totalorder %s1284_s6, %s991_s23  ;;  %p995_p0 = scmp.lt.u32.totalorder %s991_s23, %s1284_s6 }
 0x800   :  { %p997_p1 = pnand %p995_p0, %p992_p13 }
 0x802   :  { %1000 = shalt.err (!%p997_p1)
}
 0x803   :  { %761 = dma.vmem_to_hbm [thread:$0]  %s759_s3, 128, %s1284_s6, [#allocation8]  }
 0x804   :  { %s1001_s28 = scalar_lea.vmem %s749_s20, 128  ;;  %p1006_p3 = scmp.lt.s32.totalorder %s749_s20, %s749_s20 }
 0x805   :  { %p1002_p2 = scmp.ne.s32.totalorder %s749_s20, %s1001_s28  ;;  %p1007_p4 = scmp.lt.s32.totalorder %s1001_s28, %s1001_s28 }
 0x807   :  { %p1008_p5 = por %p1007_p4, %p1006_p3 }
 0x809   :  { %p1009_p6 = pnand %p1008_p5, %p1002_p2 }
 0x80b   :  { %1012 = shalt.err (!%p1009_p6)
}
 0x80c   :  { %s1013_s8 = scalar_lea.hbm %s1283_s5, 128 }
 0x80d   :  { %p1014_p7 = scmp.ne.s32.totalorder %s1283_s5, %s1013_s8  ;;  %p1017_p8 = scmp.lt.u32.totalorder %s1013_s8, %s1283_s5 }
 0x80f   :  { %p1019_p9 = pnand %p1017_p8, %p1014_p7 }
 0x811   :  { %1022 = shalt.err (!%p1019_p9)
}
 0x812   :  { %751 = dma.vmem_to_hbm [thread:$0]  %s749_s20, 128, %s1283_s5, [#allocation5]   ;;  %v800_v46 = vld [vmem:[%s1282_s4 + $0x30] ss:$0 sm:$0xff] }
 0x813   :  { %s1059_s18 = smov [#allocation9]  }
 0x814   :  { %s767_s3 = sshll.u32 %s1059_s18, 4  ;;  %s768_s3 = int_to_ptr.vmem [resolvable:$true] %s767_s3 }
 0x815   :  { %s1023_s19 = scalar_lea.vmem %s768_s3, 256  ;;  %p1028_p11 = scmp.lt.s32.totalorder %s768_s3, %s768_s3 }
 0x816   :  { %p1024_p10 = scmp.ne.s32.totalorder %s768_s3, %s1023_s19  ;;  %p1029_p12 = scmp.lt.s32.totalorder %s1023_s19, %s1023_s19 }
 0x818   :  { %p1030_p13 = por %p1029_p12, %p1028_p11 }
 0x81a   :  { %p1031_p0 = pnand %p1030_p13, %p1024_p10 }
 0x8ce   :  { %v733_v47 = vpop.f32.mrb[16].mxu1 }
 0x8cf   :  { %v734_v48 = vadd.f32 %v800_v46, %v733_v47  ;;  %v934_v49 = vpop.f32.mrb[17].mxu1 }
 0x8d0   :  { %v736_v50 = vpop.f32.mrb[18].mxu1 }
 0x8d1   :  { %740 = vst.msk [vmem:[#allocation9] sm:$0xff] %vm47_vm0, %v734_v48  ;;  %v737_v51 = vadd.f32 %v800_v46, %v736_v50  ;;  %v935_v31 = vpop.f32.mrb[19].mxu1 }
 0x8d3   :  { %741 = vst.msk [vmem:[#allocation9 + $0x8] sm:$0xff] %vm47_vm0, %v737_v51 }
 0x8d4   :  { %1034 = shalt.err (!%p1031_p0)
}
 0x8d5   :  { %s1035_s20 = scalar_lea.hbm %s1285_s7, 256 }
 0x8d6   :  { %p1036_p1 = scmp.ne.s32.totalorder %s1285_s7, %s1035_s20  ;;  %p1039_p2 = scmp.lt.u32.totalorder %s1035_s20, %s1285_s7 }
 0x8d8   :  { %p1041_p3 = pnand %p1039_p2, %p1036_p1 }
 0x8da   :  { %1044 = shalt.err (!%p1041_p3)
}
 0x8db   :  { %773 = dma.vmem_to_hbm [thread:$0]  %s768_s3, 256, %s1285_s7, [#allocation8], %s1052_s11, %s1052_s11, %s1053_s12  }
 0x8dc   :  { %1047 = dma.done.wait [#allocation5], 128  }
 0x8dd   :  { %1048 = vsyncadd [#allocation5], 4294967168 }
 0x8de   :  { %1049 = dma.done.wait [#allocation8], 384  }
 0x8df   :  { %1050 = vsyncadd [#allocation8], 4294966912 }
 0x8e0   :  { %783 = vsyncpa [#allocation4], 1 }
 0x8e1   :  { %784 = vsyncpa [#allocation5], 1 }
 0x8e2   :  { %785 = vsyncpa [#allocation8], 1 }

</bundles_post_ra>
